<compile_context>
chip_gen: v6e
topology: v6e:2x2x1
jax: 0.10.0
libtpu: 0.0.40
codegen_flags: <defaults>
</compile_context>

<pallas_src>
import functools

import numpy as np
import jax
import jax.numpy as jnp
from jax.experimental import pallas as pl
from jax.experimental.pallas import tpu as pltpu

_MEAN = (0.48145466, 0.4578275, 0.40821073)
_STD = (0.26862954, 0.26130258, 0.27577711)


# ----------------------------------------------------------------------------
# Host-side helpers
# ----------------------------------------------------------------------------
def _cubic(x, a=-0.5):
    ax = np.abs(x)
    return np.where(
        ax <= 1.0,
        (a + 2.0) * ax**3 - (a + 3.0) * ax**2 + 1.0,
        np.where(ax < 2.0, a * ax**3 - 5.0 * a * ax**2 + 8.0 * a * ax - 4.0 * a, 0.0),
    )


@functools.lru_cache(maxsize=None)
def _resize_weight_matrix(in_size, out_size):
    """(out_size, in_size) bicubic interpolation matrix (antialiased downscale)."""
    scale = in_size / out_size
    filt_scale = max(scale, 1.0)
    support = 2.0 * filt_scale
    W = np.zeros((out_size, in_size), dtype=np.float64)
    for i in range(out_size):
        center = (i + 0.5) * scale
        lo = int(np.floor(center - support))
        hi = int(np.ceil(center + support))
        js = np.arange(lo, hi + 1)
        w = _cubic((js + 0.5 - center) / filt_scale)
        s = w.sum()
        if s != 0.0:
            w = w / s
        js_cl = np.clip(js, 0, in_size - 1)
        for j, wv in zip(js_cl, w):
            W[i, j] += wv
    return W.astype(np.float32)


def _round_up(x, m):
    return ((x + m - 1) // m) * m


def _choose_tile(full, preferred, align):
    """Largest tile <= preferred that divides `full` and is `align`-aligned,
    falling back to the full (untiled) extent."""
    if full <= preferred:
        return full
    t = (preferred // align) * align
    while t >= align:
        if full % t == 0:
            return t
        t -= align
    return full


def _device_profile():
    """(dual_tensorcore, vmem_budget_bytes, preferred_tw) for the local TPU."""
    kind = ""
    try:
        kind = jax.devices()[0].device_kind.lower()
    except Exception:
        pass
    is_v7 = "v7" in kind
    dual_tc = is_v7 or ("v4" in kind) or ("v5p" in kind) or ("v5 p" in kind)
    # 64 MiB physical VMEM per TC on v7x -> stay <= ~48 MB; 128 MiB elsewhere.
    vmem_budget = (48 if is_v7 else 96) * 1024 * 1024
    tw_pref = 512 if is_v7 else 1024
    return dual_tc, vmem_budget, tw_pref


def _vmem_estimate(H_in, S, ts, tw, W_pad, img_itemsize, cdt_size, wwt_resident):
    """Per-step VMEM working set: double-buffered BlockSpec windows PLUS the
    in-kernel cast temporaries that BlockSpec math does not cover."""
    est = 2 * H_in * tw * img_itemsize              # image tile (double-buffered)
    est += 2 * ts * H_in * cdt_size                 # Wh rows (double-buffered)
    est += 2 * ts * S * 4                           # f32 output tile (resident acc)
    if wwt_resident:
        est += W_pad * S * cdt_size                 # full Ww^T, fetched once
    else:
        est += 2 * tw * S * cdt_size                # tiled Ww^T (double-buffered)
    est += H_in * tw * (4 + cdt_size)               # in-kernel image upcast temps
    est += ts * tw * (4 + cdt_size)                 # tmp (f32) + cast for 2nd matmul
    est += ts * S * 4                               # epilogue temp
    return est


# ----------------------------------------------------------------------------
# Kernel
# ----------------------------------------------------------------------------
def _preprocess_kernel(tw, wwt_resident,
                       scale_ref, bias_ref, wh_ref, wwt_ref, img_ref, out_ref):
    # Grid: (channel, output-row tile, input-column tile).  Last axis is the
    # W_in reduction ("arbitrary"); the first two are "parallel".
    c = pl.program_id(0)
    w = pl.program_id(2)

    # Output block index (c, s, 0) is w-invariant -> out_ref is the resident
    # f32 accumulator across the reduction axis.
    @pl.when(w == 0)
    def _():
        out_ref[...] = jnp.zeros(out_ref.shape, out_ref.dtype)

    # Upcast the (possibly uint8) image tile in VMEM; 1/255 is folded into Wh.
    img = img_ref[0]
    if jnp.issubdtype(img_ref.dtype, jnp.integer):
        img = img.astype(jnp.int32)
    img = img.astype(jnp.float32).astype(wh_ref.dtype)               # (H_in, tw)

    # Separable bicubic resize on the MXU (f32 accumulation).
    tmp = jnp.dot(wh_ref[...], img,
                  preferred_element_type=jnp.float32)                # (ts, tw)
    if wwt_resident:
        start = pl.multiple_of(w * tw, tw)
        ww_blk = wwt_ref[pl.ds(start, tw), :]                        # (tw, S)
    else:
        ww_blk = wwt_ref[...]                                        # (tw, S)
    out_ref[0] += jnp.dot(tmp.astype(ww_blk.dtype), ww_blk,
                          preferred_element_type=jnp.float32)        # (ts, S)

    # Fused ToTensor clamp + Normalize as a single FMA on the last W tile.
    @pl.when(w == pl.num_programs(2) - 1)
    def _():
        res01 = jnp.clip(out_ref[0], 0.0, 1.0)                       # == resized/255
        out_ref[0] = res01 * scale_ref[c] + bias_ref[c]


# ----------------------------------------------------------------------------
# Wrapper
# ----------------------------------------------------------------------------
def qwen_image_preprocess(image_chw, image_size, *, compute_dtype=jnp.bfloat16,
                          tile_s=None, tile_w=None, vmem_limit_bytes=None):
    """image_chw: (3, H_in, W_in) channel-first, uint8 (preferred, 4x less HBM
    read) or float32, values in [0, 255].  Returns
    {'pixel_values': [ (3, S, S) float32 ]} like the module."""
    C, H_in, W_in = image_chw.shape
    assert C == 3
    S = int(image_size)

    dual_tc, vmem_budget, tw_pref = _device_profile()
    if vmem_limit_bytes is not None:
        vmem_budget = int(vmem_limit_bytes)

    cdt_size = jnp.dtype(compute_dtype).itemsize
    img_itemsize = jnp.dtype(image_chw.dtype).itemsize

    # Output-row tiling: n_s = 1 on single-TC parts (never re-read the image
    # per row tile); n_s = 2 on dual-TC parts for an even megacore split.
    if tile_s is not None:
        ts = _choose_tile(S, int(tile_s), 8)
    elif dual_tc and S % 2 == 0 and (S // 2) % 8 == 0:
        ts = S // 2
    else:
        ts = S

    # Reduction tile: lane-aligned, shrunk until the estimated working set
    # (including in-kernel cast temps) fits the per-generation VMEM budget.
    tw = int(tile_w) if tile_w is not None else tw_pref
    tw = max(128, min(tw, _round_up(W_in, 128)))
    tw = (tw // 128) * 128
    while True:
        W_pad = _round_up(W_in, tw)
        wwt_resident = (W_pad * S * cdt_size) <= 8 * 1024 * 1024
        est = _vmem_estimate(H_in, S, ts, tw, W_pad, img_itemsize, cdt_size,
                             wwt_resident)
        if est <= int(0.8 * vmem_budget) or tw <= 128:
            break
        tw -= 128

    # Host-precomputed (and cached) interpolation matrices.
    #   wh : (S, H_in) with the ToTensor 1/255 folded in.
    #   wwt: (W_pad, S), pre-transposed; padded rows are zero (no effect).
    wh_np = _resize_weight_matrix(H_in, S) * np.float32(1.0 / 255.0)
    wwt_np = np.zeros((W_pad, S), dtype=np.float32)
    wwt_np[:W_in, :] = _resize_weight_matrix(W_in, S).T
    wh = jnp.asarray(wh_np, dtype=compute_dtype)
    wwt = jnp.asarray(wwt_np, dtype=compute_dtype)

    mean = np.asarray(_MEAN, dtype=np.float32)
    std = np.asarray(_STD, dtype=np.float32)
    scale = jnp.asarray(1.0 / std, dtype=jnp.float32)      # (C,)
    bias = jnp.asarray(-mean / std, dtype=jnp.float32)     # (C,)

    if W_pad != W_in:
        image_chw = jnp.pad(image_chw, ((0, 0), (0, 0), (0, W_pad - W_in)))

    if wwt_resident:
        wwt_spec = pl.BlockSpec((W_pad, S), lambda c, s, w: (0, 0))   # fetched once
    else:
        wwt_spec = pl.BlockSpec((tw, S), lambda c, s, w: (w, 0))

    grid = (C, S // ts, W_pad // tw)
    kernel = functools.partial(_preprocess_kernel, tw, wwt_resident)

    out = pl.pallas_call(
        kernel,
        out_shape=jax.ShapeDtypeStruct((C, S, S), jnp.float32),
        grid_spec=pltpu.PrefetchScalarGridSpec(
            num_scalar_prefetch=0,
            grid=grid,
            in_specs=[
                pl.BlockSpec(memory_space=pltpu.MemorySpace.SMEM),        # scale (C,)
                pl.BlockSpec(memory_space=pltpu.MemorySpace.SMEM),        # bias  (C,)
                pl.BlockSpec((ts, H_in), lambda c, s, w: (s, 0)),         # Wh rows
                wwt_spec,                                                 # Ww^T
                pl.BlockSpec((1, H_in, tw), lambda c, s, w: (c, 0, w)),   # image tile
            ],
            out_specs=pl.BlockSpec((1, ts, S), lambda c, s, w: (c, s, 0)),
        ),
        compiler_params=pltpu.CompilerParams(
            dimension_semantics=("parallel", "parallel", "arbitrary"),
            vmem_limit_bytes=vmem_budget,
        ),
    )(scale, bias, wh, wwt, image_chw)

    return {"pixel_values": [out]}


# ----------------------------------------------------------------------------
# Pure-numpy float64 reference of exactly what the kernel computes
# ----------------------------------------------------------------------------
def _reference(image_chw_f64, image_size):
    C, H_in, W_in = image_chw_f64.shape
    wh = _resize_weight_matrix(H_in, image_size).astype(np.float64)
    ww = _resize_weight_matrix(W_in, image_size).astype(np.float64)
    res = np.einsum("sh,chw,tw->cst", wh, image_chw_f64, ww) / 255.0
    res = np.clip(res, 0.0, 1.0)
    mean = np.asarray(_MEAN, dtype=np.float64)[:, None, None]
    std = np.asarray(_STD, dtype=np.float64)[:, None, None]
    return (res - mean) / std


if __name__ == "__main__":
    image_size = 16
    H_in, W_in = 96, 200      # W_in deliberately not lane-aligned -> exercises padding

    key = jax.random.PRNGKey(0)
    img_f32 = jax.random.uniform(key, (3, H_in, W_in), dtype=jnp.float32,
                                 minval=0.0, maxval=255.0)
    img_u8 = jnp.floor(img_f32).astype(jnp.uint8)   # uint8 source path (4x less HBM)

    # 1) Auto-tuned path: uint8 source, bf16 MXU operands, device-aware tiling.
    out_auto = qwen_image_preprocess(img_u8, image_size)["pixel_values"][0]
    # 2) Forced multi-tile path (2 row tiles x 2 W tiles), f32 operands.
    out_f32 = qwen_image_preprocess(img_f32, image_size,
                                    compute_dtype=jnp.float32,
                                    tile_s=8, tile_w=128)["pixel_values"][0]
    # 3) Forced multi-tile bf16 path on the uint8 source.
    out_bf16 = qwen_image_preprocess(img_u8, image_size,
                                     compute_dtype=jnp.bfloat16,
                                     tile_s=8, tile_w=128)["pixel_values"][0]
    jax.block_until_ready((out_auto, out_f32, out_bf16))

    assert out_auto.shape == (3, image_size, image_size)
    assert out_auto.dtype == jnp.float32
    assert bool(jnp.all(jnp.isfinite(out_auto)))
    assert bool(jnp.all(jnp.isfinite(out_f32)))
    assert bool(jnp.all(jnp.isfinite(out_bf16)))

    ref_u8 = _reference(np.asarray(img_u8, dtype=np.float64), image_size)
    ref_f32 = _reference(np.asarray(img_f32, dtype=np.float64), image_size)
    np.testing.assert_allclose(np.asarray(out_f32), ref_f32, atol=2e-2)
    np.testing.assert_allclose(np.asarray(out_auto), ref_u8, atol=1.5e-1)
    np.testing.assert_allclose(np.asarray(out_bf16), ref_u8, atol=1.5e-1)

    print("KERNEL_OK")
</pallas_src>

<mosaic_0001>
module attributes {stable_mosaic.version = 11 : i64} {
  func.func @_preprocess_kernel(%arg0: i32, %arg1: i32, %arg2: i32, %arg3: memref<3xf32, #tpu.memory_space<smem>>, %arg4: memref<3xf32, #tpu.memory_space<smem>>, %arg5: memref<16x96xbf16, #tpu.memory_space<vmem>>, %arg6: memref<256x16xbf16, #tpu.memory_space<vmem>>, %arg7: memref<1x96x256xi8, #tpu.memory_space<vmem>>, %arg8: memref<1x16x16xf32, #tpu.memory_space<vmem>>) attributes {dimension_semantics = [#tpu.dimension_semantics<parallel>, #tpu.dimension_semantics<parallel>, #tpu.dimension_semantics<arbitrary>], iteration_bounds = array<i64: 3, 1, 1>, scalar_prefetch = 0 : i64, scratch_operands = 0 : i64, tpu.core_type = #tpu.core_type<tc>, window_params = [{transform_indices = @transform_0, window_bounds = array<i64: 3>}, {transform_indices = @transform_1, window_bounds = array<i64: 3>}, {transform_indices = @transform_2, window_bounds = array<i64: 16, 96>}, {pipeline_mode = #tpu.pipeline_mode<synchronous>, transform_indices = @transform_3, window_bounds = array<i64: 256, 16>}, {transform_indices = @transform_4, window_bounds = array<i64: 1, 96, 256>}, {transform_indices = @transform_5, window_bounds = array<i64: 1, 16, 16>}]} {
    %c0_i32 = arith.constant 0 : i32
    %0 = arith.cmpi eq, %arg2, %c0_i32 : i32
    %1 = arith.extui %0 : i1 to i32
    %c0_i32_0 = arith.constant 0 : i32
    %2 = arith.cmpi ne, %1, %c0_i32_0 : i32
    scf.if %2 {
      %cst_15 = arith.constant 0.000000e+00 : f32
      %25 = vector.broadcast %cst_15 : f32 to vector<1x16x16xf32>
      %c0_16 = arith.constant 0 : index
      %c0_17 = arith.constant 0 : index
      %c0_18 = arith.constant 0 : index
      %26 = vector.load %arg8[%c0_16, %c0_17, %c0_18] : memref<1x16x16xf32, #tpu.memory_space<vmem>>, vector<1x16x16xf32>
      tpu.vector_store %arg8[%c0_16, %c0_17, %c0_18], %25 {strides = array<i32>} : memref<1x16x16xf32, #tpu.memory_space<vmem>>, vector<1x16x16xf32>,
    } else {
    }
    %c0 = arith.constant 0 : index
    %c0_1 = arith.constant 0 : index
    %c0_2 = arith.constant 0 : index
    %3 = vector.load %arg7[%c0, %c0_1, %c0_2] : memref<1x96x256xi8, #tpu.memory_space<vmem>>, vector<1x96x256xi8>
    %4 = vector.shape_cast %3 : vector<1x96x256xi8> to vector<96x256xi8>
    %5 = arith.extui %4 : vector<96x256xi8> to vector<96x256xi32>
    %6 = arith.sitofp %5 : vector<96x256xi32> to vector<96x256xf32>
    %7 = arith.truncf %6 : vector<96x256xf32> to vector<96x256xbf16>
    %c0_3 = arith.constant 0 : index
    %c0_4 = arith.constant 0 : index
    %8 = vector.load %arg5[%c0_3, %c0_4] : memref<16x96xbf16, #tpu.memory_space<vmem>>, vector<16x96xbf16>
    %cst = arith.constant dense<0.000000e+00> : vector<16x256xf32>
    %9 = tpu.matmul %8, %7, %cst {dimension_numbers = #tpu.dot_dimension_numbers<[1], [0], [0], [1], [0, 0, 1, 1], [], []>} : vector<16x96xbf16>, vector<96x256xbf16>, vector<16x256xf32> -> vector<16x256xf32>
    %c256_i32 = arith.constant 256 : i32
    %10 = arith.muli %arg2, %c256_i32 : i32
    %11 = tpu.assume_multiple %10, 256 : i32
    %12 = arith.index_cast %11 : i32 to index
    %c0_5 = arith.constant 0 : index
    %13 = vector.load %arg6[%12, %c0_5] : memref<256x16xbf16, #tpu.memory_space<vmem>>, vector<256x16xbf16>
    %c0_6 = arith.constant 0 : index
    %c0_7 = arith.constant 0 : index
    %c0_8 = arith.constant 0 : index
    %14 = vector.load %arg8[%c0_6, %c0_7, %c0_8] : memref<1x16x16xf32, #tpu.memory_space<vmem>>, vector<1x16x16xf32>
    %15 = vector.shape_cast %14 : vector<1x16x16xf32> to vector<16x16xf32>
    %16 = arith.truncf %9 : vector<16x256xf32> to vector<16x256xbf16>
    %cst_9 = arith.constant dense<0.000000e+00> : vector<16x16xf32>
    %17 = tpu.matmul %16, %13, %cst_9 {dimension_numbers = #tpu.dot_dimension_numbers<[1], [0], [0], [1], [0, 0, 1, 1], [], []>} : vector<16x256xbf16>, vector<256x16xbf16>, vector<16x16xf32> -> vector<16x16xf32>
    %18 = arith.addf %15, %17 : vector<16x16xf32>
    %c0_10 = arith.constant 0 : index
    %c0_11 = arith.constant 0 : index
    %c0_12 = arith.constant 0 : index
    %19 = vector.load %arg8[%c0_10, %c0_11, %c0_12] : memref<1x16x16xf32, #tpu.memory_space<vmem>>, vector<1x16x16xf32>
    %20 = vector.shape_cast %19 : vector<1x16x16xf32> to vector<16x16xf32>
    %21 = vector.shape_cast %18 : vector<16x16xf32> to vector<1x16x16xf32>
    tpu.vector_store %arg8[%c0_10, %c0_11, %c0_12], %21 {strides = array<i32>} : memref<1x16x16xf32, #tpu.memory_space<vmem>>, vector<1x16x16xf32>,
    %c0_i32_13 = arith.constant 0 : i32
    %22 = arith.cmpi eq, %arg2, %c0_i32_13 : i32
    %23 = arith.extui %22 : i1 to i32
    %c0_i32_14 = arith.constant 0 : i32
    %24 = arith.cmpi ne, %23, %c0_i32_14 : i32
    scf.if %24 {
      %c0_15 = arith.constant 0 : index
      %c0_16 = arith.constant 0 : index
      %c0_17 = arith.constant 0 : index
      %25 = vector.load %arg8[%c0_15, %c0_16, %c0_17] : memref<1x16x16xf32, #tpu.memory_space<vmem>>, vector<1x16x16xf32>
      %26 = vector.shape_cast %25 : vector<1x16x16xf32> to vector<16x16xf32>
      %cst_18 = arith.constant 0.000000e+00 : f32
      %cst_19 = arith.constant 1.000000e+00 : f32
      %27 = vector.broadcast %cst_18 : f32 to vector<16x16xf32>
      %28 = arith.maximumf %27, %26 : vector<16x16xf32>
      %29 = vector.broadcast %cst_19 : f32 to vector<16x16xf32>
      %30 = arith.minimumf %29, %28 : vector<16x16xf32>
      %31 = arith.index_cast %arg0 : i32 to index
      %32 = memref.load %arg3[%31] : memref<3xf32, #tpu.memory_space<smem>>
      %33 = vector.broadcast %32 : f32 to vector<16x16xf32>
      %34 = arith.mulf %30, %33 : vector<16x16xf32>
      %35 = arith.index_cast %arg0 : i32 to index
      %36 = memref.load %arg4[%35] : memref<3xf32, #tpu.memory_space<smem>>
      %37 = vector.broadcast %36 : f32 to vector<16x16xf32>
      %38 = arith.addf %34, %37 : vector<16x16xf32>
      %c0_20 = arith.constant 0 : index
      %c0_21 = arith.constant 0 : index
      %c0_22 = arith.constant 0 : index
      %39 = vector.load %arg8[%c0_20, %c0_21, %c0_22] : memref<1x16x16xf32, #tpu.memory_space<vmem>>, vector<1x16x16xf32>
      %40 = vector.shape_cast %39 : vector<1x16x16xf32> to vector<16x16xf32>
      %41 = vector.shape_cast %38 : vector<16x16xf32> to vector<1x16x16xf32>
      tpu.vector_store %arg8[%c0_20, %c0_21, %c0_22], %41 {strides = array<i32>} : memref<1x16x16xf32, #tpu.memory_space<vmem>>, vector<1x16x16xf32>,
    } else {
    }
    return
  }
  func.func @transform_0(%arg0: i32, %arg1: i32, %arg2: i32) -> i32 {
    %c0_i32 = arith.constant 0 : i32
    %c0_i32_0 = arith.constant 0 : i32
    return %c0_i32 : i32
  }
  func.func @transform_1(%arg0: i32, %arg1: i32, %arg2: i32) -> i32 {
    %c0_i32 = arith.constant 0 : i32
    %c0_i32_0 = arith.constant 0 : i32
    return %c0_i32 : i32
  }
  func.func @transform_2(%arg0: i32, %arg1: i32, %arg2: i32) -> (i32, i32) {
    %c0_i32 = arith.constant 0 : i32
    %c0_i32_0 = arith.constant 0 : i32
    return %arg1, %c0_i32 : i32, i32
  }
  func.func @transform_3(%arg0: i32, %arg1: i32, %arg2: i32) -> (i32, i32) {
    %c0_i32 = arith.constant 0 : i32
    %c0_i32_0 = arith.constant 0 : i32
    %c0_i32_1 = arith.constant 0 : i32
    return %c0_i32, %c0_i32_0 : i32, i32
  }
  func.func @transform_4(%arg0: i32, %arg1: i32, %arg2: i32) -> (i32, i32, i32) {
    %c0_i32 = arith.constant 0 : i32
    %c0_i32_0 = arith.constant 0 : i32
    return %arg0, %c0_i32, %arg2 : i32, i32, i32
  }
  func.func @transform_5(%arg0: i32, %arg1: i32, %arg2: i32) -> (i32, i32, i32) {
    %c0_i32 = arith.constant 0 : i32
    %c0_i32_0 = arith.constant 0 : i32
    return %arg0, %arg1, %c0_i32 : i32, i32, i32
  }
}

</mosaic_0001>

<bundles_post_ra>
// kernel: tpu_custom_call.1
= control target key start
LH: loop header
LB: loop body
LE: loop exit
PB: predicated region body
PF: predicated region fallthrough
CT: control target
= control target key end

     0   :  { %10 = vsyncpa [#allocation5], 0  ;;  %s1336_s0 = inlined_call_operand.vmem [shape: f32[3], index: 0, kind: input, shape index: {}]   ;;  %s1337_s1 = inlined_call_operand.vmem [shape: f32[3], index: 1, kind: input, shape index: {}]   ;;  %s1338_s2 = inlined_call_operand.hbm [shape: bf16[16,96], index: 2, kind: input, shape index: {}]   ;;  %s1339_s3 = inlined_call_operand.vmem [shape: bf16[256,16], index: 3, kind: input, shape index: {}]   ;;  %s1340_s4 = inlined_call_operand.vmem [shape: u8[3,96,256], index: 4, kind: input, shape index: {}]   ;;  %s1341_s5 = inlined_call_operand.hbm [shape: f32[3,16,16], index: 5, kind: output, shape index: {}]  }
   0x1   :  { %11 = vsyncpa [#allocation7], 0 }
   0x2   :  { %12 = vsyncpa [#allocation3], 0 }
   0x3   :  { %13 = vsyncpa [#allocation4], 0 }
   0x4   :  { %15 = vsyncpa [#allocation4 + $0x1], 0  ;;  %s1085_s18 = smov 0   ;;  %s1087_s19 = smov 0  }
   0x5   :  { %s1089_s20 = smov 0   ;;  %s1091_s21 = smov 0  }
   0x6   :  { %s1093_s22 = smov 0   ;;  %s1095_s23 = smov 0  }
   0x7 LB: > { %s730_s24 = sadd.s32 4294967295, %s1043_s23   ;;  %s731_s25 = sadd.s32 4294967294, %s1043_s23   ;;  %s1043_s23 = sphi %s1095_s23, %s21_s23   ;;  %s1039_s22 = sphi %s1093_s22, %s1359_s22   ;;  %s1035_s21 = sphi %s1091_s21, %s1358_s21   ;;  %s1031_s20 = sphi %s1089_s20, %s1357_s20   ;;  %s1027_s19 = sphi %s1087_s19, %s1356_s19   ;;  %s1023_s18 = sphi %s1085_s18, %s1355_s18  }
   0x8   : > { %s40_s26 = sadd.s32 1, %s1039_s22  ;;  %s166_s27 = sadd.s32 1, %s1031_s20 }
   0x9   : > { %p42_p0 = scmp.ge.s32.totalorder %s40_s26, 3  ;;  %p176_p1 = scmp.ne.s32.totalorder %s1031_s20, %s1027_s19 }
   0xa   : > { %p177_p2 = scmp.eq.s32.totalorder %s730_s24, 2  ;;  %p182_p3 = scmp.ne.s32.totalorder %s1027_s19, %s1023_s18 }
   0xb   : > { %s1361_s26 = smov (%p42_p0, %s40_s26), 0  ;;  %p183_p5 = scmp.eq.s32.totalorder %s731_s25, 2 }
   0xc   : > { %p1125_p4 = por %p177_p2, %p176_p1  ;;  %s161_s29 = ssub.s32 %s1039_s22, %s1361_s26 }
   0xd   : > { %p732_p6 = scmp.ge.s32.totalorder %s1043_s23, 1  ;;  %p164_p7 = scmp.eq.s32.totalorder %s161_s29, 0 }
   0xe   : > { %s1346_s28 = scalar_select %p1125_p4, 1, 0 }
   0xf   : > { %p1132_p8 = por %p183_p5, %p182_p3  ;;  %p190_p9 = scmp.lt.s32.totalorder %s1043_s23, 4 }
  0x10   : > { %s1138_s6 = scalar_select %p164_p7, %s1031_s20, %s166_s27  }
  0x11   : > { %s1347_s30 = scalar_select %p1132_p8, 1, 0 }
  0x12   : > { %p1140_p10 = pnand %p732_p6, %p190_p9  ;;  %p1144_p11 = scmp.eq.s32.totalorder %s730_s24, 0 }
  0x13   : > { %s203_s11 = sshll.u32 %s1336_s0, 4  ;;  %s214_s14 = sshll.u32 %s1337_s1, 4  ;;  %s204_s11 = int_to_ptr.vmem [resolvable:$true] %s203_s11  ;;  %s215_s14 = int_to_ptr.vmem [resolvable:$true] %s214_s14 }
  0x14   : > { %s1348_s7 = scalar_select %p1140_p10, 1, 0 }
  0x15   : > { %s1349_s8 = scalar_select %p1144_p11, 1, 0 }
  0x16   : > { %p804_p12 = pneg %p1140_p10  ;;  %s1045_s16 = smov [#allocation8]  }
  0x17   : > { %s227_s17 = sshll.u32 %s1045_s16, 4  ;;  %s899_s24 = scalar_lea.vmem %s204_s11, 16  ;;  %s228_s17 = int_to_ptr.vmem [resolvable:$true] %s227_s17 }
  0x18   : > { %p1158_p13 = pnand %p1144_p11, %p804_p12  ;;  %p900_p0 = scmp.ne.s32.totalorder %s204_s11, %s899_s24 }
  0x19   : > { %p907_p5 = scmp.lt.s32.totalorder %s204_s11, %s204_s11  ;;  %p908_p6 = scmp.lt.s32.totalorder %s899_s24, %s899_s24 }
  0x1a   : > { %p901_p1 = pneg %p1158_p13 }
  0x1b   : > { %p909_p7 = por %p908_p6, %p907_p5 }
  0x1c   : > { %p902_p2 = pnand %p901_p1, %p900_p0 }
  0x1e   : > { %p903_p3 = pneg %p902_p2 }
  0x20   : > { %p910_p9 = pnand %p909_p7, %p903_p3 }
  0x22   : > { %913 = shalt.err (!%p910_p9)
}
  0x23   : > { %s1046_s25 = smov [#allocation2]   ;;  %s914_s27 = scalar_lea.vmem %s215_s14, 16 }
  0x24   : > { %807 = dma.vmem_to_smem (!%p1158_p13), %s204_s11, 16, %s1046_s25, [#allocation5]  }
  0x25   : > { %p915_p12 = scmp.ne.s32.totalorder %s215_s14, %s914_s27  ;;  %p922_p11 = scmp.lt.s32.totalorder %s215_s14, %s215_s14 }
  0x26   : > { %p923_p10 = scmp.lt.s32.totalorder %s914_s27, %s914_s27 }
  0x27   : > { %p917_p8 = pnand %p915_p12, %p901_p1 }
  0x28   : > { %p924_p0 = por %p923_p10, %p922_p11 }
  0x29   : > { %p918_p4 = pneg %p917_p8 }
  0x2b   : > { %p925_p2 = pnand %p924_p0, %p918_p4 }
  0x2d   : > { %928 = shalt.err (!%p925_p2)
}
  0x2e   : > { %s1047_s29 = smov [#allocation6]   ;;  %s940_s9 = scalar_lea.vmem %s228_s17, 128 }
  0x2f   : > { %810 = dma.vmem_to_smem (!%p1158_p13), %s215_s14, 16, %s1047_s29, [#allocation7]  }
  0x30   : > { %p941_p3 = scmp.ne.s32.totalorder %s228_s17, %s940_s9  ;;  %p948_p7 = scmp.lt.s32.totalorder %s228_s17, %s228_s17 }
  0x31   : > { %p949_p9 = scmp.lt.s32.totalorder %s940_s9, %s940_s9 }
  0x32   : > { %p943_p5 = pnand %p941_p3, %p901_p1 }
  0x33   : > { %p950_p8 = por %p949_p9, %p948_p7 }
  0x34   : > { %p944_p6 = pneg %p943_p5 }
  0x36   : > { %p951_p12 = pnand %p950_p8, %p944_p6 }
  0x38   : > { %954 = shalt.err (!%p951_p12)
}
  0x39   : > { %s1048_s10 = smov 64   ;;  %s1049_s11 = smov 4  }
  0x3a   : > { %813 = dma.hbm_to_vmem [thread:$0]  (!%p1158_p13), %s1338_s2, 128, %s228_s17, [#allocation3], %s1048_s10, %s1048_s10, %s1049_s11  }
  0x3b   : > { %p1351_p4 = scmp.ne.s32.totalorder %s1348_s7, 0 }
  0x3c   : > { %p1352_p10 = scmp.ne.s32.totalorder (!%p1351_p4), %s1349_s8, 0 }
  0x3d   : > { %259 = sbr.rel (%p1351_p4) target bundleno = 542 (0x21e), region = 40 }
  0x42   : > { %1006 = dma.done.wait (%p1352_p10), [#allocation5], 16  }
  0x43   : > { %1008 = vsyncadd (%p1352_p10), [#allocation5], 4294967280 }
  0x44   : > { %1010 = dma.done.wait (%p1352_p10), [#allocation7], 16  }
  0x45   : > { %1012 = vsyncadd (%p1352_p10), [#allocation7], 4294967280 }
  0x46   : > { %1014 = dma.done.wait (%p1352_p10), [#allocation3], 128  }
  0x47   : > { %1016 = vsyncadd (%p1352_p10), [#allocation3], 4294967168 }
  0x48   : > { %273 = sfence }
  0x49   : > { %p302_p11 = scmp.lt.s32.totalorder %s1035_s21, 2  ;;  %v1050_v0 = vmov 0   ;;  %v883_v1 = vld [vmem:[%s1339_s3 + $0x78] sm:$0xff]   ;;  %v885_v3 = vld [vmem:[%s1339_s3 + $0x70] sm:$0xff]   ;;  %v887_v5 = vld [vmem:[%s1339_s3 + $0x68] sm:$0xff]   ;;  %vm345_vm0 = vcmask 785408  }
  0x4a   : > { %381 = vmatprep.mubr.bf16.mxu0 %v1050_v0  ;;  %v884_v2 = vld [vmem:[%s1339_s3 + $0x38] sm:$0xff]   ;;  %767 = vmatprep.subr.bf16.mxu1 %v883_v1  ;;  %v886_v4 = vld [vmem:[%s1339_s3 + $0x30] sm:$0xff]   ;;  %v888_v12 = vld [vmem:[%s1339_s3 + $0x28] sm:$0xff]   ;;  %s297_s8 = sand.u32 1, %s1027_s19   ;;  %vm317_vm1 = vcmask 130048   ;;  %v1051_v42 = vmov 0.0  }
  0x4b   : > { %s303_s7 = scalar_select %p302_p11, %s1035_s21, 2  ;;  %768 = vmatpush3.bf16.msra.mxu1 %v884_v2  ;;  %v889_v13 = vld [vmem:[%s1339_s3 + $0x60] sm:$0xff]   ;;  %v891_v18 = vld [vmem:[%s1339_s3 + $0x58] sm:$0xff]   ;;  %v893_v23 = vld [vmem:[%s1339_s3 + $0x50] sm:$0xff]  }
  0x4c   : > { %769 = vmatprep.subr.bf16.mxu1 %v885_v3  ;;  %v890_v17 = vld [vmem:[%s1339_s3 + $0x20] sm:$0xff]   ;;  %v892_v21 = vld [vmem:[%s1339_s3 + $0x18] sm:$0xff]   ;;  %v894_v27 = vld [vmem:[%s1339_s3 + $0x10] sm:$0xff]   ;;  %s741_s27 = sshll.u32 %s297_s8, 4  ;;  %s584_s9 = sld [smem:[#allocation2 + %s1035_s21]] }
  0x4d   : > { %s789_s24 = smul.u32 48, %s303_s7  ;;  %v882_v31 = vld [vmem:[#allocation8] sm:$0xff]   ;;  %v895_v32 = vld [vmem:[%s1339_s3 + $0x48] sm:$0xff]   ;;  %s1260_s29 = scalar_lea.vmem [#allocation9], %s741_s27 }
  0x4e   : > { %v896_v33 = vld [vmem:[%s1339_s3 + $0x8] sm:$0xff]   ;;  %v897_v34 = vld [vmem:[%s1339_s3 + $0x40] sm:$0xff]   ;;  %318 = vst.msk [vmem:[%s1260_s29] sm:$0xff] %vm317_vm1, %v1051_v42  ;;  %319 = vst.msk [vmem:[%s1260_s29 + $0x8] sm:$0xff] %vm317_vm1, %v1051_v42  ;;  %s588_s10 = sld [smem:[#allocation6 + %s1035_s21]]  ;;  %s766_s12 = sshll.u32 %s1035_s21, 8 }
  0x4f   : > { %s1213_s11 = scalar_lea.vmem %s1340_s4, %s789_s24  ;;  %770 = vmatpush3.bf16.msra.mxu1 %v886_v4  ;;  %v898_v35 = vld [vmem:[%s1339_s3] sm:$0xff]   ;;  %s610_s13 = sshll.u32 %s1260_s29, 4  ;;  %s1285_s13 = int_to_ptr.vmem [resolvable:$true] %s610_s13 }
  0x50   : > { %v325_v6 = vld [vmem:[%s1213_s11 + $0x28] sm:$0xff]  ;;  %v324_v7 = vld [vmem:[%s1213_s11 + $0x20] sm:$0xff]  ;;  %v323_v11 = vld [vmem:[%s1213_s11 + $0x18] sm:$0xff]  ;;  %771 = vmatprep.subr.bf16.mxu1 %v887_v5  ;;  %s1283_s14 = scalar_lea.hbm %s1341_s5, %s766_s12  ;;  %s1291_s15 = scalar_lea.sflag [#allocation4], %s297_s8 }
  0x51   : > { %v335_v8 = vunpack.c.l.u8.bf16 %v325_v6  ;;  %v337_v9 = vunpack.c.h.u8.bf16 %v325_v6  ;;  %v336_v10 = vunpack.c.h.u8.bf16 %v324_v7  ;;  %v334_v14 = vunpack.c.l.u8.bf16 %v324_v7  ;;  %v322_v16 = vld [vmem:[%s1213_s11 + $0x10] sm:$0xff]  ;;  %v321_v20 = vld [vmem:[%s1213_s11 + $0x8] sm:$0xff]  ;;  %v320_v26 = vld [vmem:[%s1213_s11] sm:$0xff]  ;;  %s955_s21 = scalar_lea.vmem %s1285_s13, 256  ;;  %p1353_p1 = scmp.ne.s32.totalorder %s1346_s28, 0 }
  0x52   : > { %v333_v15 = vunpack.c.h.u8.bf16 %v323_v11  ;;  %v332_v19 = vunpack.c.h.u8.bf16 %v322_v16  ;;  %v331_v22 = vunpack.c.l.u8.bf16 %v323_v11  ;;  %v330_v24 = vunpack.c.l.u8.bf16 %v322_v16  ;;  %p956_p13 = scmp.ne.s32.totalorder %s1285_s13, %s955_s21  ;;  %s1052_s16 = smov [#allocation9]  }
  0x53   : > { %353 = vmatprep.subr.bf16.mxu0 %v337_v9  ;;  %772 = vmatpush3.bf16.msra.mxu1 %v888_v12  ;;  %v329_v25 = vunpack.c.h.u8.bf16 %v321_v20  ;;  %v328_v28 = vunpack.c.h.u8.bf16 %v320_v26  ;;  %v327_v29 = vunpack.c.l.u8.bf16 %v321_v20  ;;  %v326_v30 = vunpack.c.l.u8.bf16 %v320_v26  ;;  %s959_s17 = sshll.u32 %s1052_s16, 4  ;;  %s960_s17 = int_to_ptr.vmem [resolvable:$false] %s959_s17 }
  0x54   : > { %354 = vmatpush1.bf16.msra.mxu0 %v336_v10  ;;  %773 = vmatprep.subr.bf16.mxu1 %v889_v13  ;;  %v585_v55 = vstv %s584_s9  ;;  %v589_v58 = vstv %s588_s10  ;;  %p957_p0 = pnand %p956_p13, %p1353_p1  ;;  %s961_s24 = scalar_lea.vmem %s960_s17, 512 }
  0x55   : > { %355 = vmatprep.subr.bf16.mxu0 %v335_v8  ;;  %v429_v44 = vld [vmem:[%s1260_s29] sm:$0xff]  ;;  %v430_v49 = vld [vmem:[%s1260_s29 + $0x8] sm:$0xff]  ;;  %p962_p3 = scmp.lt.s32.totalorder %s1285_s13, %s960_s17  ;;  %p963_p5 = scmp.lt.s32.totalorder %s961_s24, %s955_s21 }
  0x56   : > { %p958_p2 = pneg %p957_p0 }
  0x57   : > { %774 = vmatpush3.bf16.msra.mxu1 %v890_v17  ;;  %p964_p6 = por %p963_p5, %p962_p3 }
  0x58   : > { %356 = vmatpush1.bf16.msra.mxu0 %v334_v14  ;;  %775 = vmatprep.subr.bf16.mxu1 %v891_v18 }
  0x59   : > { %357 = vmatprep.subr.bf16.mxu0 %v333_v15  ;;  %p965_p7 = pnand %p964_p6, %p958_p2 }
  0x5b   : > { %776 = vmatpush3.bf16.msra.mxu1 %v892_v21 }
  0x5c   : > { %358 = vmatpush1.bf16.msra.mxu0 %v332_v19  ;;  %777 = vmatprep.subr.bf16.mxu1 %v893_v23 }
  0x5d   : > { %359 = vmatprep.subr.bf16.mxu0 %v331_v22 }
  0x5f   : > { %778 = vmatpush3.bf16.msra.mxu1 %v894_v27 }
  0x60   : > { %360 = vmatpush1.bf16.msra.mxu0 %v330_v24  ;;  %779 = vmatprep.subr.bf16.mxu1 %v895_v32 }
  0x61   : > { %361 = vmatprep.subr.bf16.mxu0 %v329_v25 }
  0x63   : > { %780 = vmatpush3.bf16.msra.mxu1 %v896_v33 }
  0x64   : > { %362 = vmatpush1.bf16.msra.mxu0 %v328_v28  ;;  %781 = vmatprep.subr.bf16.mxu1 %v897_v34 }
  0x65   : > { %363 = vmatprep.subr.bf16.mxu0 %v327_v29 }
  0x67   : > { %782 = vmatpush3.bf16.msra.mxu1 %v898_v35 }
  0x68   : > { %364 = vmatpush1.bf16.msra.mxu0 %v326_v30 }
  0x6b   : > { %744 = vmatmul.mubr.msk.bf16.vlgmr.msra.gmra.mxu0 %vm345_vm0, %v882_v31 }
 0x12b   : > { %v383_v36 = vpop.f32.mrf.mxu0 }
 0x12d   : > { %v385_v37 = vpop.f32.mrf.mxu0 }
 0x12f   : > { %v387_v38 = vpop.f32.mrf.mxu0 }
 0x130   : > { %v431_v41 = vpack.c.bf16 %v387_v38, %v383_v36 }
 0x131   : > { %v389_v39 = vpop.f32.mrf.mxu0 }
 0x132   : > { %v432_v40 = vpack.c.bf16 %v389_v39, %v385_v37 }
 0x134   : > { %561 = vmatprep.mubr.bf16.mxu1 %v432_v40 }
 0x135   : > { %562 = vmatmul.mubr.bf16.vlgmr.msra.gmra.mxu1 %v431_v41 }
 0x1f5   : > { %v783_v43 = vpop.f32.mrf.mxu1 }
 0x1f7   : > { %v784_v45 = vpop.f32.mrf.mxu1 }
 0x1f8   : > { %v785_v46 = vadd.f32 %v784_v45, %v783_v43 }
 0x1f9   : > { %v786_v47 = vpop.f32.mrf.mxu1 }
 0x1fa   : > { %v570_v48 = vadd.f32 %v785_v46, %v429_v44 }
 0x1fb   : > { %v787_v50 = vpop.f32.mrf.mxu1 }
 0x1fc   : > { %573 = vst.msk [vmem:[%s1260_s29] sm:$0xff] %vm317_vm1, %v570_v48  ;;  %v788_v51 = vadd.f32 %v787_v50, %v786_v47 }
 0x1fe   : > { %v571_v52 = vadd.f32 %v788_v51, %v430_v49 }
 0x200   : > { %574 = vst.msk [vmem:[%s1260_s29 + $0x8] sm:$0xff] %vm317_vm1, %v571_v52 }
 0x203   : > { %v578_v53 = vld [vmem:[%s1260_s29] sm:$0xff] }
 0x204   : > { %v580_v54 = vmax.f32 %v578_v53, 0.0 }
 0x206   : > { %v582_v56 = vmin.f32 %v580_v54, 1.0 }
 0x207   : > { %v579_v57 = vld [vmem:[%s1260_s29 + $0x8] sm:$0xff] }
 0x208   : > { %v581_v59 = vmax.f32 %v579_v57, 0.0  ;;  %v586_v60 = vmul.f32 %v585_v55, %v582_v56 }
 0x20a   : > { %v583_v61 = vmin.f32 %v581_v59, 1.0  ;;  %v590_v62 = vadd.f32 %v589_v58, %v586_v60 }
 0x20c   : > { %v587_v63 = vmul.f32 %v585_v55, %v583_v61  ;;  %592 = vst.msk [vmem:[%s1260_s29] sm:$0xff] %vm317_vm1, %v590_v62 }
 0x20e   : > { %v591_v0 = vadd.f32 %v589_v58, %v587_v63 }
 0x210   : > { %593 = vst.msk [vmem:[%s1260_s29 + $0x8] sm:$0xff] %vm317_vm1, %v591_v0 }
 0x211   : > { %968 = shalt.err (!%p965_p7)
}
 0x212   : > { %s969_s25 = scalar_lea.hbm %s1283_s14, 256  ;;  %s973_s29 = scalar_lea.hbm %s1341_s5, 768 }
 0x213   : > { %p970_p9 = scmp.ne.s32.totalorder %s1283_s14, %s969_s25  ;;  %p974_p4 = scmp.lt.s32.totalorder %s1283_s14, %s1341_s5 }
 0x214   : > { %p975_p10 = scmp.lt.s32.totalorder %s973_s29, %s969_s25 }
 0x215   : > { %p971_p8 = pnand %p970_p9, %p1353_p1 }
 0x216   : > { %p976_p11 = por %p975_p10, %p974_p4 }
 0x217   : > { %p972_p12 = pneg %p971_p8 }
 0x219   : > { %p977_p13 = pnand %p976_p11, %p972_p12 }
 0x21b   : > { %980 = shalt.err (!%p977_p13)
}
 0x21c   : > { %s1053_s12 = smov 128   ;;  %s1054_s7 = smov 8  }
 0x21d   : > { %802 = dma.vmem_to_hbm [thread:$0]  (%p1353_p1), %s1285_s13, 256, %s1283_s14, %s1291_s15, %s1053_s12, %s1053_s12, %s1054_s7  }
 0x21e PF: > { %p824_p0 = scmp.ge.s32.totalorder %s1043_s23, 2  ;;  %s625_s11 = sand.u32 1, %s1023_s18  }
 0x21f   : > { %p1354_p2 = scmp.ne.s32.totalorder %s1347_s30, 0  ;;  %s626_s21 = scalar_lea.sflag [#allocation4], %s625_s11 }
 0x221   : > { %p815_p3 = pnand %p824_p0, %p1354_p2 }
 0x223   : > { %p816_p5 = pneg %p815_p3 }
 0x225   : > { %1018 = dma.done.wait (%p816_p5), %s626_s21, 256  }
 0x226   : > { %1020 = vsyncadd (%p816_p5), %s626_s21, 4294967040  ;;  %s21_s23 = sadd.s32 1, %s1043_s23   ;;  %s1355_s18 = smov %s1027_s19 }
 0x227   : > { %p18_p6 = scmp.ge.s32.totalorder %s21_s23, 5   ;;  %s1356_s19 = smov %s1031_s20 }
 0x228   : > { %s1357_s20 = smov %s1138_s6  ;;  %s1358_s21 = smov %s1039_s22 }
 0x229   : > { %s1359_s22 = smov %s1361_s26  ;;  %20 = sbr.rel (!%p18_p6) target bundleno = 7 (0x7), region = 99 }
 0x22e   :  { %631 = vsyncpa [#allocation3], 1 }
 0x22f   :  { %633 = vsyncpa [#allocation3 + $0x1], 1 }
 0x230   :  { %634 = vsyncpa [#allocation4], 1 }
 0x231   :  { %636 = vsyncpa [#allocation4 + $0x1], 1 }
 0x232   :  { %637 = vsyncpa [#allocation5], 1 }
 0x233   :  { %639 = vsyncpa [#allocation5 + $0x1], 1 }
 0x234   :  { %640 = vsyncpa [#allocation7], 1 }

</bundles_post_ra>
